<compile_context>
chip_gen: v7x
topology: tpu7x:2x2x1
jax: 0.10.0
libtpu: 0.0.40
codegen_flags: <defaults>
</compile_context>

<pallas_src>
import functools
from typing import NamedTuple

import jax
import jax.numpy as jnp
import numpy as np
from jax.experimental import pallas as pl
from jax.experimental.pallas import tpu as pltpu

LOG_STD_MAX = 2.0
LOG_STD_MIN = -5.0


class Dims(NamedTuple):
    input_dim: int
    hidden_dim: int
    action_dim: int
    n_lstm: int


# ------------------------------ fused kernel --------------------------------

def _fused_actor_kernel(obs_ref, state_ref, w_ref, b_ref,
                        new_state_ref, logstd_ref, *, H, A, n):
    """One step of ActorSlowLSTM.forward, fully fused.

    state layout (lanes): [h0 (H) | h1..hn (nH) | c1..cn (nH) | mean (A) | log_std (A)]
    fused-matmul column layout: [lin (H) | i_all (nH) | f_all (nH) | o_all (nH)
                                 | g_all (nH) | mean,log_std heads (2A)]
    """
    nH = n * H

    h_all = state_ref[:, 0:(n + 1) * H]                       # old h_0 .. h_n
    c_old = state_ref[:, (n + 1) * H:(2 * n + 1) * H]         # old c_1 .. c_n
    old_logstd = state_ref[:, (2 * n + 1) * H + A:(2 * n + 1) * H + 2 * A]

    # --- single block-banded matmul: [obs | h_0..h_n] @ W_big + b_big ------
    lhs = jnp.concatenate([obs_ref[...], h_all], axis=-1).astype(w_ref.dtype)
    y = jnp.dot(lhs, w_ref[...],
                preferred_element_type=jnp.float32) + b_ref[...]

    # --- block-0 Linear + ReLU ----------------------------------------------
    h0_new = jnp.maximum(y[:, 0:H], 0.0)

    # --- all LSTM cells at once (gate columns pre-permuted at init) ---------
    # sigmoid(x) = 0.5*(tanh(x/2)+1): one EUP push covering i|f|o of all cells
    sig = 0.5 * (jnp.tanh(0.5 * y[:, H:H + 3 * nH]) + 1.0)
    i_all = sig[:, 0:nH]
    f_all = sig[:, nH:2 * nH]
    o_all = sig[:, 2 * nH:3 * nH]
    g_all = jnp.tanh(y[:, H + 3 * nH:H + 4 * nH])             # one EUP push

    c_new = f_all * c_old + i_all * g_all                     # pure VALU

    # tanh(c_new) and tanh(old log_std) share one EUP push
    t = jnp.tanh(jnp.concatenate([c_new, old_logstd], axis=-1))
    h_new = o_all * t[:, 0:nH]

    heads = y[:, H + 4 * nH:H + 4 * nH + 2 * A]               # raw new [mean, log_std]

    # --- single lane-dense store of the whole new state slab ----------------
    new_state_ref[...] = jnp.concatenate([h0_new, h_new, c_new, heads], axis=-1)

    # squashed OLD log_std (the value the module returns this step)
    logstd_ref[...] = LOG_STD_MIN + 0.5 * (LOG_STD_MAX - LOG_STD_MIN) * (t[:, nH:] + 1.0)


# --------------------------- packed-state forward ----------------------------

def actor_slow_lstm_forward_packed(obs, state, w_big, b_big, dims):
    """Fast path: recurrent state kept as one packed slab between steps.

    Returns (mean, log_std, new_state):
      mean     = OLD raw mean head output   (hidden_activations[-1][0])
      log_std  = tanh-squashed OLD log_std  (as in the PyTorch module)
      new_state= packed new hidden activations (feed back in next step).
    """
    H, A, n = dims.hidden_dim, dims.action_dim, dims.n_lstm
    B = obs.shape[0]
    S = (2 * n + 1) * H + 2 * A
    assert state.shape == (B, S)

    kernel = functools.partial(_fused_actor_kernel, H=H, A=A, n=n)
    vmem = pl.BlockSpec(memory_space=pltpu.MemorySpace.VMEM)

    new_state, log_std = pl.pallas_call(
        kernel,
        out_shape=(jax.ShapeDtypeStruct((B, S), jnp.float32),
                   jax.ShapeDtypeStruct((B, A), jnp.float32)),
        in_specs=[vmem, vmem, vmem, vmem],
        out_specs=(vmem, vmem),
        input_output_aliases={1: 0},      # state slab updated in place when donated
        compiler_params=pltpu.CompilerParams(vmem_limit_bytes=32 * 1024 * 1024),
    )(obs, state, w_big, b_big)

    mean = state[:, (2 * n + 1) * H:(2 * n + 1) * H + A]      # OLD mean
    return mean, log_std, new_state


# ------------------- list-interface compatibility wrapper --------------------

def pack_state(hidden_activations, dims):
    n = dims.n_lstm
    hs = [hidden_activations[k][0] for k in range(n + 1)]
    cs = [hidden_activations[k + 1][1] for k in range(n)]
    mean, log_std = hidden_activations[-1]
    return jnp.concatenate(hs + cs + [mean, log_std], axis=-1)


def unpack_state(state, dims):
    H, A, n = dims.hidden_dim, dims.action_dim, dims.n_lstm
    hidden = [(state[:, 0:H], None)]
    for k in range(n):
        h = state[:, (k + 1) * H:(k + 2) * H]
        c = state[:, (n + 1) * H + k * H:(n + 1) * H + (k + 1) * H]
        hidden.append((h, c))
    ms = (2 * n + 1) * H
    hidden.append((state[:, ms:ms + A], state[:, ms + A:ms + 2 * A]))
    return hidden


def actor_slow_lstm_forward(obs, hidden_activations, w_big, b_big, dims):
    """Drop-in equivalent of ActorSlowLSTM.forward(obs, hidden_activations)."""
    state = pack_state(hidden_activations, dims)
    mean, log_std, new_state = actor_slow_lstm_forward_packed(obs, state, w_big, b_big, dims)
    return mean, log_std, unpack_state(new_state, dims)


# ------------------------------ parameter setup ------------------------------

def init_raw_params(key, input_dim, hidden_dim, action_dim, n_lstm):
    """PyTorch-equivalent raw parameters (weights stored as (in, out))."""
    assert n_lstm >= 1
    H = hidden_dim

    def uni(k, shape, fan_in):
        bound = 1.0 / np.sqrt(fan_in)
        return jax.random.uniform(k, shape, jnp.float32, -bound, bound)

    ks = iter(jax.random.split(key, 6 + 4 * n_lstm))
    raw = {
        "w0": uni(next(ks), (input_dim, H), input_dim),
        "b0": uni(next(ks), (H,), input_dim),
    }
    w_ih, w_hh, b_ih, b_hh = [], [], [], []
    for _ in range(n_lstm):
        w_ih.append(uni(next(ks), (H, 4 * H), H))     # gate order [i, f, g, o]
        w_hh.append(uni(next(ks), (H, 4 * H), H))
        b_ih.append(uni(next(ks), (4 * H,), H))
        b_hh.append(uni(next(ks), (4 * H,), H))
    raw["w_ih"] = jnp.stack(w_ih)
    raw["w_hh"] = jnp.stack(w_hh)
    raw["b_ih"] = jnp.stack(b_ih)
    raw["b_hh"] = jnp.stack(b_hh)
    raw["w_mean"] = uni(next(ks), (H, action_dim), H)
    raw["b_mean"] = uni(next(ks), (action_dim,), H)
    raw["w_logstd"] = uni(next(ks), (H, action_dim), H)
    raw["b_logstd"] = uni(next(ks), (action_dim,), H)
    return raw


def fuse_params(raw, mxu_dtype=jnp.float32):
    """Build the single block-banded fused weight with permuted gate columns.

    Row blocks of W_big:    [obs (IN) | h_0 (H) | h_1 (H) | ... | h_n (H)]
    Column blocks of W_big: [lin (H) | i_all (nH) | f_all (nH) | o_all (nH)
                             | g_all (nH) | mean (A) | log_std (A)]
    """
    w0 = np.asarray(raw["w0"], np.float32)
    b0 = np.asarray(raw["b0"], np.float32)
    w_ih = np.asarray(raw["w_ih"], np.float32)
    w_hh = np.asarray(raw["w_hh"], np.float32)
    b_ih = np.asarray(raw["b_ih"], np.float32)
    b_hh = np.asarray(raw["b_hh"], np.float32)
    w_mean = np.asarray(raw["w_mean"], np.float32)
    b_mean = np.asarray(raw["b_mean"], np.float32)
    w_logstd = np.asarray(raw["w_logstd"], np.float32)
    b_logstd = np.asarray(raw["b_logstd"], np.float32)

    IN, H = w0.shape
    n = w_ih.shape[0]
    A = w_mean.shape[1]
    K = IN + (n + 1) * H
    N = H + 4 * n * H + 2 * A

    W = np.zeros((K, N), np.float32)
    b = np.zeros((1, N), np.float32)

    # block-0 Linear (driven by obs)
    W[0:IN, 0:H] = w0
    b[0, 0:H] = b0

    # LSTM cells: cell k consumes x = h_k (rows IN+k*H) and h = h_{k+1}
    GATE_SRC = {"i": 0, "f": 1, "g": 2, "o": 3}     # nn.LSTMCell layout
    GATE_DST = {"i": 0, "f": 1, "o": 2, "g": 3}     # fused (sigmoid-first) layout
    for k in range(n):
        row_x = IN + k * H
        row_h = IN + (k + 1) * H
        for g in ("i", "f", "o", "g"):
            src = GATE_SRC[g] * H
            dst = H + GATE_DST[g] * n * H + k * H
            W[row_x:row_x + H, dst:dst + H] = w_ih[k][:, src:src + H]
            W[row_h:row_h + H, dst:dst + H] = w_hh[k][:, src:src + H]
            b[0, dst:dst + H] = b_ih[k][src:src + H] + b_hh[k][src:src + H]

    # heads (driven by h_n = OLD last-LSTM-layer h)
    row_hn = IN + n * H
    hd = H + 4 * n * H
    W[row_hn:row_hn + H, hd:hd + A] = w_mean
    W[row_hn:row_hn + H, hd + A:hd + 2 * A] = w_logstd
    b[0, hd:hd + A] = b_mean
    b[0, hd + A:hd + 2 * A] = b_logstd

    dims = Dims(IN, H, A, n)
    return jnp.asarray(W, mxu_dtype), jnp.asarray(b, jnp.float32), dims


# ------------------------------ pure-JAX reference ---------------------------

def _ref_forward(obs, hidden_activations, raw):
    H = raw["w0"].shape[1]
    A = raw["w_mean"].shape[1]
    n = raw["w_ih"].shape[0]

    new_hidden = [(jax.nn.relu(obs @ raw["w0"] + raw["b0"]), None)]
    for k in range(n):
        x_in = hidden_activations[k][0]
        h_old, c_old = hidden_activations[k + 1]
        gates = (x_in @ raw["w_ih"][k] + raw["b_ih"][k]
                 + h_old @ raw["w_hh"][k] + raw["b_hh"][k])
        i_g = jax.nn.sigmoid(gates[:, 0 * H:1 * H])
        f_g = jax.nn.sigmoid(gates[:, 1 * H:2 * H])
        g_g = jnp.tanh(gates[:, 2 * H:3 * H])
        o_g = jax.nn.sigmoid(gates[:, 3 * H:4 * H])
        c_new = f_g * c_old + i_g * g_g
        h_new = o_g * jnp.tanh(c_new)
        new_hidden.append((h_new, c_new))

    head_in = hidden_activations[-2][0]
    new_mean = head_in @ raw["w_mean"] + raw["b_mean"]
    new_log_std = head_in @ raw["w_logstd"] + raw["b_logstd"]
    new_hidden.append((new_mean, new_log_std))

    mean, log_std = hidden_activations[-1]
    t = jnp.tanh(log_std)
    log_std = LOG_STD_MIN + 0.5 * (LOG_STD_MAX - LOG_STD_MIN) * (t + 1.0)
    return mean, log_std, new_hidden


# ----------------------------------- main -----------------------------------

if __name__ == "__main__":
    B, IN_DIM, HID, ACT, N_LAYERS = 8, 16, 32, 4, 2
    T = 3   # recurrent steps to exercise state feedback / aliasing

    root = jax.random.PRNGKey(0)
    k_par, k_obs, k_hid = jax.random.split(root, 3)

    raw = init_raw_params(k_par, IN_DIM, HID, ACT, N_LAYERS)
    # f32 MXU operands for the tiny demo; use mxu_dtype=jnp.bfloat16 at production H.
    w_big, b_big, dims = fuse_params(raw, mxu_dtype=jnp.float32)

    obs_seq = jax.random.normal(k_obs, (T, B, IN_DIM), jnp.float32)

    # "Old" hidden activations (what get_activations would have produced).
    hk = iter(jax.random.split(k_hid, 2 * N_LAYERS + 3))
    hidden = [(jax.random.normal(next(hk), (B, HID), jnp.float32), None)]
    for _ in range(N_LAYERS):
        hidden.append((jax.random.normal(next(hk), (B, HID), jnp.float32),
                       jax.random.normal(next(hk), (B, HID), jnp.float32)))
    hidden.append((jax.random.normal(next(hk), (B, ACT), jnp.float32),
                   jax.random.normal(next(hk), (B, ACT), jnp.float32)))

    fwd = jax.jit(actor_slow_lstm_forward_packed,
                  static_argnums=(4,), donate_argnums=(1,))

    # --- multi-step rollout: packed kernel path vs pure-JAX reference -------
    state = pack_state(hidden, dims)
    hid_ref = hidden
    for t in range(T):
        mean, log_std, state = fwd(obs_seq[t], state, w_big, b_big, dims)
        jax.block_until_ready((mean, log_std, state))
        r_mean, r_log_std, hid_ref = _ref_forward(obs_seq[t], hid_ref, raw)

        np.testing.assert_allclose(np.asarray(mean), np.asarray(r_mean),
                                   atol=1e-4, rtol=1e-4)
        np.testing.assert_allclose(np.asarray(log_std), np.asarray(r_log_std),
                                   atol=1e-4, rtol=1e-4)
        got_hidden = unpack_state(state, dims)
        for (gh, gc), (rh, rc) in zip(got_hidden, hid_ref):
            np.testing.assert_allclose(np.asarray(gh), np.asarray(rh),
                                       atol=1e-4, rtol=1e-4)
            if rc is not None:
                np.testing.assert_allclose(np.asarray(gc), np.asarray(rc),
                                           atol=1e-4, rtol=1e-4)

    # --- also exercise the list-interface compatibility wrapper once --------
    r_mean, r_log_std, r_hidden = _ref_forward(obs_seq[0], hidden, raw)
    m2, ls2, hid2 = actor_slow_lstm_forward(obs_seq[0], hidden, w_big, b_big, dims)
    jax.block_until_ready((m2, ls2))
    np.testing.assert_allclose(np.asarray(m2), np.asarray(r_mean), atol=1e-4, rtol=1e-4)
    np.testing.assert_allclose(np.asarray(ls2), np.asarray(r_log_std), atol=1e-4, rtol=1e-4)
    for (gh, gc), (rh, rc) in zip(hid2, r_hidden):
        np.testing.assert_allclose(np.asarray(gh), np.asarray(rh), atol=1e-4, rtol=1e-4)
        if rc is not None:
            np.testing.assert_allclose(np.asarray(gc), np.asarray(rc), atol=1e-4, rtol=1e-4)

    print("KERNEL_OK")
</pallas_src>

<mosaic_0001>
module attributes {stable_mosaic.version = 11 : i64} {
  func.func @_fused_actor_kernel(%arg0: memref<8x16xf32, #tpu.memory_space<vmem>>, %arg1: memref<8x168xf32, #tpu.memory_space<vmem>>, %arg2: memref<112x296xf32, #tpu.memory_space<vmem>>, %arg3: memref<1x296xf32, #tpu.memory_space<vmem>>, %arg4: memref<8x168xf32, #tpu.memory_space<vmem>>, %arg5: memref<8x4xf32, #tpu.memory_space<vmem>>) attributes {dimension_semantics = [], scalar_prefetch = 0 : i64, scratch_operands = 0 : i64, tpu.core_type = #tpu.core_type<tc>} {
    %c0 = arith.constant 0 : index
    %c0_0 = arith.constant 0 : index
    %0 = vector.load %arg1[%c0, %c0_0] : memref<8x168xf32, #tpu.memory_space<vmem>>, vector<8x96xf32>
    %c0_1 = arith.constant 0 : index
    %c96 = arith.constant 96 : index
    %1 = vector.load %arg1[%c0_1, %c96] : memref<8x168xf32, #tpu.memory_space<vmem>>, vector<8x64xf32>
    %c0_2 = arith.constant 0 : index
    %c164 = arith.constant 164 : index
    %2 = vector.load %arg1[%c0_2, %c164] : memref<8x168xf32, #tpu.memory_space<vmem>>, vector<8x4xf32>
    %c0_3 = arith.constant 0 : index
    %c0_4 = arith.constant 0 : index
    %3 = vector.load %arg0[%c0_3, %c0_4] : memref<8x16xf32, #tpu.memory_space<vmem>>, vector<8x16xf32>
    %4 = tpu.concatenate %3, %0 in 1 : vector<8x16xf32>, vector<8x96xf32> -> vector<8x112xf32>
    %c0_5 = arith.constant 0 : index
    %c0_6 = arith.constant 0 : index
    %5 = vector.load %arg2[%c0_5, %c0_6] : memref<112x296xf32, #tpu.memory_space<vmem>>, vector<112x296xf32>
    %cst = arith.constant dense<0.000000e+00> : vector<8x296xf32>
    %6 = tpu.matmul %4, %5, %cst {dimension_numbers = #tpu.dot_dimension_numbers<[1], [0], [0], [1], [0, 0, 1, 1], [], []>} : vector<8x112xf32>, vector<112x296xf32>, vector<8x296xf32> -> vector<8x296xf32>
    %c0_7 = arith.constant 0 : index
    %c0_8 = arith.constant 0 : index
    %7 = vector.load %arg3[%c0_7, %c0_8] : memref<1x296xf32, #tpu.memory_space<vmem>>, vector<1x296xf32>
    %8 = vector.broadcast %7 : vector<1x296xf32> to vector<8x296xf32>
    %9 = arith.addf %6, %8 : vector<8x296xf32>
    %10 = vector.extract_strided_slice %9 {offsets = [0, 0], sizes = [8, 32], strides = [1, 1]} : vector<8x296xf32> to vector<8x32xf32>
    %cst_9 = arith.constant 0.000000e+00 : f32
    %11 = vector.broadcast %cst_9 : f32 to vector<8x32xf32>
    %12 = arith.maximumf %10, %11 : vector<8x32xf32>
    %13 = vector.extract_strided_slice %9 {offsets = [0, 32], sizes = [8, 192], strides = [1, 1]} : vector<8x296xf32> to vector<8x192xf32>
    %cst_10 = arith.constant 5.000000e-01 : f32
    %14 = vector.broadcast %cst_10 : f32 to vector<8x192xf32>
    %15 = arith.mulf %14, %13 : vector<8x192xf32>
    %16 = math.tanh %15 : vector<8x192xf32>
    %cst_11 = arith.constant 1.000000e+00 : f32
    %17 = vector.broadcast %cst_11 : f32 to vector<8x192xf32>
    %18 = arith.addf %16, %17 : vector<8x192xf32>
    %cst_12 = arith.constant 5.000000e-01 : f32
    %19 = vector.broadcast %cst_12 : f32 to vector<8x192xf32>
    %20 = arith.mulf %19, %18 : vector<8x192xf32>
    %21 = vector.extract_strided_slice %20 {offsets = [0, 0], sizes = [8, 64], strides = [1, 1]} : vector<8x192xf32> to vector<8x64xf32>
    %22 = vector.extract_strided_slice %20 {offsets = [0, 64], sizes = [8, 64], strides = [1, 1]} : vector<8x192xf32> to vector<8x64xf32>
    %23 = vector.extract_strided_slice %20 {offsets = [0, 128], sizes = [8, 64], strides = [1, 1]} : vector<8x192xf32> to vector<8x64xf32>
    %24 = vector.extract_strided_slice %9 {offsets = [0, 224], sizes = [8, 64], strides = [1, 1]} : vector<8x296xf32> to vector<8x64xf32>
    %25 = math.tanh %24 : vector<8x64xf32>
    %26 = arith.mulf %22, %1 : vector<8x64xf32>
    %27 = arith.mulf %21, %25 : vector<8x64xf32>
    %28 = arith.addf %26, %27 : vector<8x64xf32>
    %29 = tpu.concatenate %28, %2 in 1 : vector<8x64xf32>, vector<8x4xf32> -> vector<8x68xf32>
    %30 = math.tanh %29 : vector<8x68xf32>
    %31 = vector.extract_strided_slice %30 {offsets = [0, 0], sizes = [8, 64], strides = [1, 1]} : vector<8x68xf32> to vector<8x64xf32>
    %32 = arith.mulf %23, %31 : vector<8x64xf32>
    %33 = vector.extract_strided_slice %9 {offsets = [0, 288], sizes = [8, 8], strides = [1, 1]} : vector<8x296xf32> to vector<8x8xf32>
    %34 = tpu.concatenate %12, %32, %28, %33 in 1 : vector<8x32xf32>, vector<8x64xf32>, vector<8x64xf32>, vector<8x8xf32> -> vector<8x168xf32>
    %c0_13 = arith.constant 0 : index
    %c0_14 = arith.constant 0 : index
    %35 = vector.load %arg4[%c0_13, %c0_14] : memref<8x168xf32, #tpu.memory_space<vmem>>, vector<8x168xf32>
    tpu.vector_store %arg4[%c0_13, %c0_14], %34 {strides = array<i32>} : memref<8x168xf32, #tpu.memory_space<vmem>>, vector<8x168xf32>,
    %36 = vector.extract_strided_slice %30 {offsets = [0, 64], sizes = [8, 4], strides = [1, 1]} : vector<8x68xf32> to vector<8x4xf32>
    %cst_15 = arith.constant 1.000000e+00 : f32
    %37 = vector.broadcast %cst_15 : f32 to vector<8x4xf32>
    %38 = arith.addf %36, %37 : vector<8x4xf32>
    %cst_16 = arith.constant 3.500000e+00 : f32
    %39 = vector.broadcast %cst_16 : f32 to vector<8x4xf32>
    %40 = arith.mulf %39, %38 : vector<8x4xf32>
    %cst_17 = arith.constant -5.000000e+00 : f32
    %41 = vector.broadcast %cst_17 : f32 to vector<8x4xf32>
    %42 = arith.addf %41, %40 : vector<8x4xf32>
    %c0_18 = arith.constant 0 : index
    %c0_19 = arith.constant 0 : index
    %43 = vector.load %arg5[%c0_18, %c0_19] : memref<8x4xf32, #tpu.memory_space<vmem>>, vector<8x4xf32>
    tpu.vector_store %arg5[%c0_18, %c0_19], %42 {strides = array<i32>} : memref<8x4xf32, #tpu.memory_space<vmem>>, vector<8x4xf32>,
    return
  }
}

</mosaic_0001>

<bundles_post_ra>
// kernel: actor_slow_lstm_forward_packed.1
= control target key start
LH: loop header
LB: loop body
LE: loop exit
PB: predicated region body
PF: predicated region fallthrough
CT: control target
= control target key end

     0   :  { %v419_v2 = vmov 0.0|0.0   ;;  %v420_v3 = vmov 0.0   ;;  %s421_s22 = smov 16   ;;  %vm422_vm0 = vmmov 0   ;;  %vm26_vm1 = vcmask 130048   ;;  %s424_s9 = smov 32   ;;  %s623_s1 = inlined_call_operand.vmem [shape: f32[8,168], index: 1, kind: input, shape index: {}, may-alias: {1,4}]   ;;  %s624_s2 = inlined_call_operand.vmem [shape: f32[112,296], index: 2, kind: input, shape index: {}]   ;;  %s625_s0 = inlined_call_operand.vmem [shape: f32[8,16], index: 0, kind: input, shape index: {}]   ;;  %s626_s3 = inlined_call_operand.vmem [shape: f32[1,296], index: 3, kind: input, shape index: {}]   ;;  %s627_s4 = inlined_call_operand.vmem [shape: f32[8,168], index: 4, kind: output, shape index: {0}, may-alias: {1,4}]   ;;  %s628_s5 = inlined_call_operand.vmem [shape: f32[8,4], index: 5, kind: output, shape index: {1}]  }
   0x1   :  { %v459_v0 = vld [vmem:[%s623_s1] sm:$0xff]  ;;  %v29_v1 = vld [vmem:[%s624_s2 + $0x8] sm:$0xff]  ;;  %381 = vmatprep.subr.bf16.mxu1 %v419_v2  ;;  %155 = vmatprep.mubr.f32.mxu0 %v420_v3  ;;  %v31_v6 = vld [vmem:[%s624_s2 + $0x18] sm:$0xff]  ;;  %vm87_vm2 = vcmask 916480   ;;  %vm251_vm3 = vcmask 523264   ;;  %vm267_vm4 = vcmask 261120  }
   0x2   :  { %23 = vrot.lane.b32.xlu0 %v459_v0, %s421_s22  ;;  %v32_v4 = vld [vmem:[%s624_s2 + $0x20] sm:$0xff]  ;;  %350 = vmatprep.mubr.msk.f32.mxu1 %vm422_vm0, %v420_v3  ;;  %v30_v9 = vld [vmem:[%s624_s2 + $0x10] sm:$0xff]  ;;  %v33_v10 = vld [vmem:[%s624_s2 + $0x28] sm:$0xff]  ;;  %vm286_vm5 = vcmask 326656   ;;  %s425_s12 = smov 28   ;;  %vm282_vm6 = vcmask 785408  }
   0x3   :  { %v28_v5 = vld [vmem:[%s624_s2] sm:$0xff]  ;;  %v353_v7 = vpack.c.bf16 %v32_v4, %v29_v1  ;;  %v35_v11 = vld [vmem:[%s624_s2 + $0x38] sm:$0xff]  ;;  %v382_v12 = vpack.c.bf16 %v33_v10, %v30_v9  ;;  %v38_v13 = vld [vmem:[%s624_s2 + $0x50] sm:$0xff]  ;;  %vm295_vm7 = vcmask 31744  }
   0x4   :  { %v355_v8 = vpack.c.bf16 %v31_v6, %v28_v5  ;;  %v34_v14 = vld [vmem:[%s624_s2 + $0x30] sm:$0xff]  ;;  %v37_v15 = vld [vmem:[%s624_s2 + $0x48] sm:$0xff]  ;;  %v357_v16 = vpack.c.bf16 %v38_v13, %v35_v11  ;;  %v36_v17 = vld [vmem:[%s624_s2 + $0x40] sm:$0xff] }
   0x5   :  { %354 = vmatprep.subr.bf16.mxu0 %v353_v7  ;;  %v39_v18 = vld [vmem:[%s624_s2 + $0x58] sm:$0xff]  ;;  %v41_v19 = vld [vmem:[%s624_s2 + $0x68] sm:$0xff]  ;;  %383 = vmatpush3.bf16.msra.mxu1 %v382_v12  ;;  %v359_v20 = vpack.c.bf16 %v37_v15, %v34_v14  ;;  %v44_v22 = vld [vmem:[%s624_s2 + $0x80] sm:$0xff]  ;;  %v72_v7 = vlaneseq }
   0x6   :  { %356 = vmatpush1.bf16.msra.mxu0 %v355_v8  ;;  %v385_v21 = vpack.c.bf16 %v39_v18, %v36_v17  ;;  %v40_v23 = vld [vmem:[%s624_s2 + $0x60] sm:$0xff]  ;;  %384 = vmatprep.subr.bf16.mxu1 %v419_v2  ;;  %v361_v24 = vpack.c.bf16 %v44_v22, %v41_v19  ;;  %v43_v25 = vld [vmem:[%s624_s2 + $0x78] sm:$0xff]  ;;  %v42_v26 = vld [vmem:[%s624_s2 + $0x70] sm:$0xff] }
   0x7   :  { %358 = vmatprep.subr.bf16.mxu0 %v357_v16  ;;  %v45_v27 = vld [vmem:[%s624_s2 + $0x88] sm:$0xff]  ;;  %v47_v28 = vld [vmem:[%s624_s2 + $0x98] sm:$0xff]  ;;  %v50_v29 = vld [vmem:[%s624_s2 + $0xb0] sm:$0xff]  ;;  %v363_v30 = vpack.c.bf16 %v43_v25, %v40_v23  ;;  %v73_v8 = vshrl.u32 %v72_v7, 7 }
   0x8   :  { %v388_v31 = vpack.c.bf16 %v45_v27, %v42_v26  ;;  %v46_v32 = vld [vmem:[%s624_s2 + $0x90] sm:$0xff]  ;;  %v365_v33 = vpack.c.bf16 %v50_v29, %v47_v28  ;;  %v49_v34 = vld [vmem:[%s624_s2 + $0xa8] sm:$0xff]  ;;  %v48_v35 = vld [vmem:[%s624_s2 + $0xa0] sm:$0xff] }
   0x9   :  { %386 = vmatpush3.bf16.msra.mxu1 %v385_v21  ;;  %v51_v36 = vld [vmem:[%s624_s2 + $0xb8] sm:$0xff]  ;;  %v53_v37 = vld [vmem:[%s624_s2 + $0xc8] sm:$0xff]  ;;  %v56_v38 = vld [vmem:[%s624_s2 + $0xe0] sm:$0xff]  ;;  %v367_v39 = vpack.c.bf16 %v49_v34, %v46_v32  ;;  %v82_v9 = vsub.s32 2, %v73_v8  ;;  %v74_v21 = vsub.s32 0, %v73_v8 }
   0xa   :  { %360 = vmatpush1.bf16.msra.mxu0 %v359_v20  ;;  %387 = vmatprep.subr.bf16.mxu1 %v419_v2  ;;  %v391_v40 = vpack.c.bf16 %v51_v36, %v48_v35  ;;  %v52_v41 = vld [vmem:[%s624_s2 + $0xc0] sm:$0xff]  ;;  %v369_v42 = vpack.c.bf16 %v56_v38, %v53_v37  ;;  %v55_v43 = vld [vmem:[%s624_s2 + $0xd8] sm:$0xff]  ;;  %v54_v44 = vld [vmem:[%s624_s2 + $0xd0] sm:$0xff] }
   0xb   :  { %362 = vmatprep.subr.bf16.mxu0 %v361_v24  ;;  %v57_v45 = vld [vmem:[%s624_s2 + $0xe8] sm:$0xff]  ;;  %v59_v46 = vld [vmem:[%s624_s2 + $0xf8] sm:$0xff]  ;;  %v62_v47 = vld [vmem:[%s624_s2 + $0x110] sm:$0xff]  ;;  %v371_v48 = vpack.c.bf16 %v55_v43, %v52_v41 }
   0xc   :  { %v394_v49 = vpack.c.bf16 %v57_v45, %v54_v44  ;;  %v58_v50 = vld [vmem:[%s624_s2 + $0xf0] sm:$0xff]  ;;  %v373_v51 = vpack.c.bf16 %v62_v47, %v59_v46  ;;  %v61_v52 = vld [vmem:[%s624_s2 + $0x108] sm:$0xff]  ;;  %v60_v53 = vld [vmem:[%s624_s2 + $0x100] sm:$0xff] }
   0xd   :  { %389 = vmatpush3.bf16.msra.mxu1 %v388_v31  ;;  %v63_v54 = vld [vmem:[%s624_s2 + $0x118] sm:$0xff]  ;;  %v65_v55 = vld [vmem:[%s624_s2 + $0x128] sm:$0xff]  ;;  %v68_v56 = vld [vmem:[%s624_s2 + $0x140] sm:$0xff]  ;;  %v375_v57 = vpack.c.bf16 %v61_v52, %v58_v50 }
   0xe   :  { %364 = vmatpush1.bf16.msra.mxu0 %v363_v30  ;;  %390 = vmatprep.subr.bf16.mxu1 %v419_v2  ;;  %v397_v58 = vpack.c.bf16 %v63_v54, %v60_v53  ;;  %v64_v59 = vld [vmem:[%s624_s2 + $0x120] sm:$0xff]  ;;  %v377_v60 = vpack.c.bf16 %v68_v56, %v65_v55  ;;  %v67_v61 = vld [vmem:[%s624_s2 + $0x138] sm:$0xff]  ;;  %v66_v62 = vld [vmem:[%s624_s2 + $0x130] sm:$0xff] }
   0xf   :  { %366 = vmatprep.subr.bf16.mxu0 %v365_v33  ;;  %v69_v63 = vld [vmem:[%s624_s2 + $0x148] sm:$0xff]  ;;  %v379_v1 = vpack.c.bf16 %v67_v61, %v64_v59  ;;  %v21_v4 = vld [vmem:[%s625_s0] sm:$0xff]  ;;  %s423_s0 = smov 64  }
  0x10   :  { %v400_v3 = vpack.c.bf16 %v69_v63, %v66_v62  ;;  %v70_v10 = vld [vmem:[%s626_s3] sm:$0x7]  ;;  %v20_v36 = vld [vmem:[%s623_s1 + $0x8] sm:$0xff] }
  0x11   :  { %392 = vmatpush3.bf16.msra.mxu1 %v391_v40  ;;  %v83_v11 = vrot.slane %v70_v10, %v82_v9  ;;  %v75_v22 = vrot.slane %v70_v10, %v74_v21 }
  0x12   :  { %368 = vmatpush1.bf16.msra.mxu0 %v367_v39  ;;  %393 = vmatprep.subr.bf16.mxu1 %v419_v2 }
  0x13   :  { %370 = vmatprep.subr.bf16.mxu0 %v369_v42 }
  0x15   :  { %395 = vmatpush3.bf16.msra.mxu1 %v394_v49 }
  0x16   :  { %372 = vmatpush1.bf16.msra.mxu0 %v371_v48  ;;  %396 = vmatprep.subr.bf16.mxu1 %v419_v2 }
  0x17   :  { %374 = vmatprep.subr.bf16.mxu0 %v373_v51 }
  0x19   :  { %398 = vmatpush3.bf16.msra.mxu1 %v397_v58 }
  0x1a   :  { %376 = vmatpush1.bf16.msra.mxu0 %v375_v57  ;;  %399 = vmatprep.subr.bf16.mxu1 %v419_v2  ;;  %v78_v2 = vsub.s32 1, %v73_v8 }
  0x1b   :  { %378 = vmatprep.subr.bf16.mxu0 %v377_v60 }
  0x1c   :  { %v79_v12 = vrot.slane %v70_v10, %v78_v2 }
  0x1d   :  { %401 = vmatpush3.bf16.msra.mxu1 %v400_v3 }
  0x1e   :  { %380 = vmatpush1.bf16.msra.mxu0 %v379_v1 }
  0x74   :  { %v24_v5 = vpop.permute.xlu0 %23 }
  0x75   :  { %v27_v6 = vsel %vm26_vm1, %v21_v4, %v24_v5 }
  0x76   :  { %305 = vmatmul.mubr.msk.f32.vlgmr.msra.gmra.mrb[0].mxu0 %vm87_vm2, %v27_v6  ;;  %351 = vmatmul.mubr.msk.f32.vlgmr.msra.gmra.mrb[0].mxu1 %vm87_vm2, %v27_v6 }
 0x149   :  { %v157_v13 = vpop.f32.mrb[0].mxu0  ;;  %v228_v14 = vpop.f32.mrb[0].mxu1 }
 0x14a   :  { %v229_v15 = vadd.f32 %v228_v14, %v83_v11  ;;  %v159_v16 = vpop.f32.mrb[1].mxu0  ;;  %v352_v17 = vpop.f32.mrb[1].mxu1  ;;  %v158_v23 = vadd.f32 %v157_v13, %v75_v22 }
 0x14b   :  { %v160_v18 = vadd.f32 %v159_v16, %v79_v12 }
 0x14c   :  { %409 = vtanh.f32 %v229_v15  ;;  %v233_v24 = vmul.f32 0.5, %v158_v23  ;;  %v232_v52 = vmax.f32 %v158_v23, 0.0 }
 0x14d   :  { %411 = vtanh.f32 %v160_v18  ;;  %v234_v32 = vmul.f32 0.5, %v160_v18 }
 0x14e   :  { %413 = vtanh.f32 %v233_v24 }
 0x14f   :  { %415 = vtanh.f32 %v234_v32 }
 0x156   :  { %v410_v19 = vpop.eup %409 }
 0x157   :  { %v412_v20 = vpop.eup %411  ;;  %249 = vrot.lane.b32.xlu1 %v410_v19, %s423_s0 }
 0x158   :  { %247 = vrot.lane.b32.xlu0 %v412_v20, %s423_s0  ;;  %v414_v25 = vpop.eup %413 }
 0x159   :  { %v237_v26 = vadd.f32 1.0, %v414_v25  ;;  %v416_v33 = vpop.eup %415 }
 0x15a   :  { %v238_v34 = vadd.f32 1.0, %v416_v33 }
 0x15b   :  { %v239_v29 = vmul.f32 0.5, %v237_v26 }
 0x15c   :  { %v240_v35 = vmul.f32 0.5, %v238_v34 }
 0x15d   :  { %v243_v38 = vmul.f32 %v239_v29, %v459_v0 }
 0x15e   :  { %v244_v37 = vmul.f32 %v240_v35, %v20_v36 }
 0x1c9   :  { %v250_v27 = vpop.permute.xlu1 %249 }
 0x1ca   :  { %v248_v28 = vpop.permute.xlu0 %247 }
 0x1cb   :  { %v252_v30 = vsel %vm251_vm3, %v248_v28, %v250_v27 }
 0x1cc   :  { %v254_v31 = vmul.f32 %v252_v30, %v239_v29 }
 0x1ce   :  { %256 = vrot.lane.b32.xlu1 %v254_v31, %s423_s0 }
 0x240   :  { %v257_v39 = vpop.permute.xlu1 %256 }
 0x241   :  { %v259_v40 = vadd.f32 %v257_v39, %v243_v38  ;;  %v260_v41 = vadd.f32 %v257_v39, %v244_v37 }
 0x243   :  { %265 = vrot.lane.b32.xlu1 %v260_v41, %s424_s9  ;;  %263 = vrot.lane.b32.xlu0 %v259_v40, %s424_s9  ;;  %v284_v42 = vsel %vm267_vm4, %v260_v41, %v229_v15 }
 0x244   :  { %287 = vst.msk [vmem:[%s627_s4 + $0x8] sm:$0xff] %vm286_vm5, %v284_v42 }
 0x247   :  { %271 = vrot.lane.b32.xlu0 %v20_v36, %s425_s12 }
 0x2b5   :  { %v264_v43 = vpop.permute.xlu0 %263  ;;  %v266_v44 = vpop.permute.xlu1 %265 }
 0x2b6   :  { %v268_v0 = vsel %vm267_vm4, %v264_v43, %v266_v44 }
 0x2b9   :  { %v272_v45 = vpop.permute.xlu0 %271 }
 0x2ba   :  { %v274_v46 = vsel %vm251_vm3, %v268_v0, %v272_v45 }
 0x2bb   :  { %417 = vtanh.f32 %v274_v46 }
 0x2c5   :  { %v418_v47 = vpop.eup %417 }
 0x2c6   :  { %277 = vrot.lane.b32.xlu1 %v418_v47, %s424_s9  ;;  %v288_v48 = vadd.f32 1.0, %v418_v47 }
 0x2c8   :  { %v289_v49 = vmul.f32 3.5, %v288_v48 }
 0x2ca   :  { %v290_v50 = vadd.f32 -5.0, %v289_v49 }
 0x2cc   :  { %292 = vrot.lane.b32.xlu0 %v290_v50, %s423_s0 }
 0x338   :  { %v278_v51 = vpop.permute.xlu1 %277 }
 0x339   :  { %v280_v53 = vmul.f32 %v278_v51, %v240_v35 }
 0x33b   :  { %v281_v54 = vsel %vm267_vm4, %v232_v52, %v280_v53 }
 0x33c   :  { %v283_v55 = vsel %vm282_vm6, %v281_v54, %v259_v40 }
 0x33d   :  { %285 = vst [vmem:[%s627_s4] sm:$0xff] %v283_v55 }
 0x33e   :  { %v293_v56 = vpop.permute.xlu0 %292 }
 0x33f   :  { %296 = vst.msk [vmem:[%s628_s5] sm:$0xff] %vm295_vm7, %v293_v56 }

</bundles_post_ra>
